<compile_context>
chip_gen: v7x
topology: tpu7x:2x2x1
jax: 0.10.0
libtpu: 0.0.40
codegen_flags: <defaults>
</compile_context>

<pallas_src>
import functools

import jax
import jax.numpy as jnp
from jax import lax
from jax.experimental import pallas as pl
from jax.experimental.pallas import tpu as pltpu


def _round_up(x, m):
    return (x + m - 1) // m * m


# ----------------------------------------------------------------------------
# Kernel 1: fused Q|K|V projection (one lane-dense MXU matmul per token tile).
# ----------------------------------------------------------------------------
def _qkv_proj_kernel(x_ref, w_ref, b_ref, q_ref, k_ref, v_ref, *, dq):
    xb = x_ref[0].astype(jnp.bfloat16)                       # (tp, C_pad)
    qkv = jnp.dot(xb, w_ref[...], preferred_element_type=jnp.float32)
    qkv = (qkv + b_ref[...]).astype(jnp.bfloat16)            # (tp, 2*dq + C_pad)
    q_ref[0] = qkv[:, :dq]
    k_ref[0] = qkv[:, dq:2 * dq]
    v_ref[0] = qkv[:, 2 * dq:]


# ----------------------------------------------------------------------------
# Kernel 2: flash-style attention with online softmax + fused residual.
# ----------------------------------------------------------------------------
def _attn_kernel(x_ref, q_ref, k_ref, v_ref, kbias_ref, gamma_ref, o_ref,
                 m_sc, l_sc, acc_sc, *, mask_keys):
    ki = pl.program_id(2)

    @pl.when(ki == 0)
    def _init():
        m_sc[...] = jnp.full_like(m_sc, -jnp.inf)
        l_sc[...] = jnp.zeros_like(l_sc)
        acc_sc[...] = jnp.zeros_like(acc_sc)

    # Scores: contract channel dims directly (no transpose of K -> no XLU copy).
    s = lax.dot_general(q_ref[0], k_ref[0], (((1,), (1,)), ((), ())),
                        preferred_element_type=jnp.float32)   # (tq, tk) f32

    if mask_keys:  # static flag; only emitted when the token axis was padded.
        s = s + kbias_ref[...]                                # -1e30 on padded keys

    # Online softmax (all elementwise math in f32; v5e has no bf16 VPU).
    m_new = jnp.maximum(m_sc[...], jnp.max(s, axis=-1, keepdims=True))
    alpha = jnp.exp(m_sc[...] - m_new)
    p = jnp.exp(s - m_new)
    l_sc[...] = alpha * l_sc[...] + jnp.sum(p, axis=-1, keepdims=True)
    acc_sc[...] = alpha * acc_sc[...] + jnp.dot(
        p.astype(jnp.bfloat16), v_ref[0], preferred_element_type=jnp.float32)
    m_sc[...] = m_new

    @pl.when(ki == pl.num_programs(2) - 1)
    def _finalize():
        out = acc_sc[...] / l_sc[...]          # exact reciprocal (review feedback)
        gamma = gamma_ref[0, 0]
        o_ref[0] = (gamma * out + x_ref[0].astype(jnp.float32)).astype(o_ref.dtype)


# ----------------------------------------------------------------------------
# Wrapper
# ----------------------------------------------------------------------------
def self_attention(x_nchw, wq, bq, wk, bk, wv, bv, gamma, *,
                   max_tile_q=256, max_tile_k=512):
    """x_nchw: (B, C, H, W). wq/wk: (C//8, C), wv: (C, C), 1-D biases, scalar gamma."""
    assert max_tile_k % max_tile_q == 0
    B, C, H, W = x_nchw.shape
    HW = H * W
    C8 = wq.shape[0]
    f32 = jnp.float32

    # Lane padding: channel dims -> multiples of 128 (lane-dense tiles).
    C_pad = _round_up(C, 128)
    C8_pad = _round_up(C8, 128)

    # Token tiling: decoupled q / k tiles (tk a multiple of tq).
    hw8 = _round_up(HW, 8)
    if hw8 <= max_tile_k:
        tq = tk = hw8
    else:
        tq, tk = max_tile_q, max_tile_k
    HW_pad = _round_up(HW, tk)
    assert HW_pad % tq == 0 and HW_pad % tk == 0
    assert HW_pad - HW < tk, "last key tile must contain at least one valid token"
    n_q, n_k = HW_pad // tq, HW_pad // tk
    tp, n_p = tk, HW_pad // tk                     # projection token tile

    # NCHW -> token-major (B, HW, C); f32 kept for the exact residual path.
    x_flat = jnp.transpose(x_nchw, (0, 2, 3, 1)).reshape(B, HW, C).astype(f32)
    if HW_pad != HW or C_pad != C:                 # skip the HBM copy when possible
        x_flat = jnp.pad(x_flat, ((0, 0), (0, HW_pad - HW), (0, C_pad - C)))

    # Fused [Wq | Wk | Wv] projection weights (pre-transposed, lane-padded, bf16).
    wq_t = jnp.pad(wq.astype(f32).T, ((0, C_pad - C), (0, C8_pad - C8)))
    wk_t = jnp.pad(wk.astype(f32).T, ((0, C_pad - C), (0, C8_pad - C8)))
    wv_t = jnp.pad(wv.astype(f32).T, ((0, C_pad - C), (0, C_pad - C)))
    w_qkv = jnp.concatenate([wq_t, wk_t, wv_t], axis=1).astype(jnp.bfloat16)
    b_qkv = jnp.concatenate([
        jnp.pad(bq.astype(f32), (0, C8_pad - C8)),
        jnp.pad(bk.astype(f32), (0, C8_pad - C8)),
        jnp.pad(bv.astype(f32), (0, C_pad - C)),
    ]).reshape(1, 2 * C8_pad + C_pad)
    d_all = 2 * C8_pad + C_pad

    # --- Projection pass: Q/K/V precomputed once (removes the n_q-fold redo). ---
    q_all, k_all, v_all = pl.pallas_call(
        functools.partial(_qkv_proj_kernel, dq=C8_pad),
        out_shape=(
            jax.ShapeDtypeStruct((B, HW_pad, C8_pad), jnp.bfloat16),
            jax.ShapeDtypeStruct((B, HW_pad, C8_pad), jnp.bfloat16),
            jax.ShapeDtypeStruct((B, HW_pad, C_pad), jnp.bfloat16),
        ),
        grid=(B, n_p),
        in_specs=[
            pl.BlockSpec((1, tp, C_pad), lambda b, p: (b, p, 0)),      # x tile
            pl.BlockSpec((C_pad, d_all), lambda b, p: (0, 0)),         # [Wq|Wk|Wv]^T
            pl.BlockSpec((1, d_all), lambda b, p: (0, 0)),             # [bq|bk|bv]
        ],
        out_specs=(
            pl.BlockSpec((1, tp, C8_pad), lambda b, p: (b, p, 0)),
            pl.BlockSpec((1, tp, C8_pad), lambda b, p: (b, p, 0)),
            pl.BlockSpec((1, tp, C_pad), lambda b, p: (b, p, 0)),
        ),
        compiler_params=pltpu.CompilerParams(
            dimension_semantics=("parallel", "parallel")),
    )(x_flat, w_qkv, b_qkv)

    # Additive key-padding bias: padded keys (rows that are just the bias after
    # zero-padding x) get -1e30 so exp underflows to 0 -- one VPU add per step,
    # no iota/compare/select, no -inf NaN hazard.
    mask_keys = bool(HW_pad > HW)
    pos = jnp.arange(HW_pad, dtype=jnp.int32)
    kbias = jnp.where(pos < HW, 0.0, -1e30).astype(f32).reshape(1, HW_pad)
    gamma2 = jnp.asarray(gamma, f32).reshape(1, 1)

    # Generation-aware VMEM limit (only queried/raised when actually needed).
    attn_vmem = (2 * tq * C_pad * 4            # x q-tile, f32, double-buffered
                 + 2 * tq * C8_pad * 2         # Q tile, bf16
                 + 2 * tk * C8_pad * 2         # K tile, bf16
                 + 2 * tk * C_pad * 2          # V tile, bf16
                 + 2 * tk * 4                  # kbias
                 + 2 * tq * C_pad * 4          # output tile
                 + tq * C_pad * 4 + 2 * tq * 4)  # scratch (acc, m, l)
    vmem_limit = None
    if attn_vmem > 12 * 1024 * 1024:
        try:
            cap = pltpu.get_tpu_info().vmem_capacity_bytes
        except Exception:
            cap = 64 * 1024 * 1024             # conservative (v7x per-TC)
        vmem_limit = int(min(2 * attn_vmem, (cap * 3) // 4))

    kernel = functools.partial(_attn_kernel, mask_keys=mask_keys)

    out_flat = pl.pallas_call(
        kernel,
        out_shape=jax.ShapeDtypeStruct((B, HW_pad, C_pad), x_nchw.dtype),
        grid=(B, n_q, n_k),
        in_specs=[
            pl.BlockSpec((1, tq, C_pad), lambda b, qi, ki: (b, qi, 0)),   # x (residual)
            pl.BlockSpec((1, tq, C8_pad), lambda b, qi, ki: (b, qi, 0)),  # Q q-tile
            pl.BlockSpec((1, tk, C8_pad), lambda b, qi, ki: (b, ki, 0)),  # K k-tile
            pl.BlockSpec((1, tk, C_pad), lambda b, qi, ki: (b, ki, 0)),   # V k-tile
            pl.BlockSpec((1, tk), lambda b, qi, ki: (0, ki)),             # key bias
            pl.BlockSpec(memory_space=pltpu.MemorySpace.SMEM),            # gamma
        ],
        out_specs=pl.BlockSpec((1, tq, C_pad), lambda b, qi, ki: (b, qi, 0)),
        scratch_shapes=[
            pltpu.VMEM((tq, 1), jnp.float32),     # running max m
            pltpu.VMEM((tq, 1), jnp.float32),     # running denominator l
            pltpu.VMEM((tq, C_pad), jnp.float32),  # output accumulator
        ],
        compiler_params=pltpu.CompilerParams(
            dimension_semantics=("parallel", "parallel", "arbitrary"),
            vmem_limit_bytes=vmem_limit),
    )(x_flat, q_all, k_all, v_all, kbias, gamma2)

    if HW_pad != HW or C_pad != C:
        out_flat = out_flat[:, :HW, :C]
    out = out_flat.reshape(B, H, W, C)
    return jnp.transpose(out, (0, 3, 1, 2))


def reference(x_nchw, wq, bq, wk, bk, wv, bv, gamma):
    """Pure-JAX f32 reference mirroring the PyTorch forward exactly."""
    B, C, H, W = x_nchw.shape
    HW = H * W
    x_flat = x_nchw.reshape(B, C, HW)                              # (B, C, HW)
    q = jnp.einsum('oc,bcn->bon', wq, x_flat) + bq[None, :, None]  # (B, C8, HW)
    k = jnp.einsum('oc,bcn->bon', wk, x_flat) + bk[None, :, None]
    v = jnp.einsum('oc,bcn->bon', wv, x_flat) + bv[None, :, None]  # (B, C, HW)
    attn = jnp.einsum('bcn,bcm->bnm', q, k)                        # (B, HW, HW)
    attn = jax.nn.softmax(attn, axis=-1)
    out = jnp.einsum('bnm,bcm->bnc', attn, v)                      # (B, HW, C)
    out = jnp.transpose(out, (0, 2, 1)).reshape(B, C, H, W)
    return gamma * out + x_nchw


if __name__ == "__main__":
    B, C, H, W = 2, 32, 8, 8       # in_channels=32 -> C//8 = 4
    C8 = C // 8

    key = jax.random.PRNGKey(0)
    ks = jax.random.split(key, 8)
    x = jax.random.normal(ks[0], (B, C, H, W), jnp.float32)

    # Deterministic synthetic parameters (PyTorch conv weight (out,in,1,1) squeezed).
    wq = jax.random.normal(ks[1], (C8, C), jnp.float32) * 0.1
    bq = jax.random.normal(ks[2], (C8,), jnp.float32) * 0.1
    wk = jax.random.normal(ks[3], (C8, C), jnp.float32) * 0.1
    bk = jax.random.normal(ks[4], (C8,), jnp.float32) * 0.1
    wv = jax.random.normal(ks[5], (C, C), jnp.float32) * 0.1
    bv = jax.random.normal(ks[6], (C,), jnp.float32) * 0.1
    # PyTorch inits gamma to 0 (forward == identity); use a nonzero value so the
    # attention path is actually exercised.  No 1/sqrt(d) scaling, matching the module.
    gamma = jnp.float32(0.5)

    out = self_attention(x, wq, bq, wk, bk, wv, bv, gamma)
    out = jax.block_until_ready(out)

    ref = reference(x, wq, bq, wk, bk, wv, bv, gamma)
    assert out.shape == (B, C, H, W)
    # bf16 MXU inputs (Q/K/V rounded to bf16) -> looser tolerance than pure f32.
    max_err = float(jnp.max(jnp.abs(out - ref)))
    assert jnp.allclose(out, ref, atol=5e-2, rtol=5e-2), f"mismatch vs reference (max abs err {max_err})"

    print("KERNEL_OK")
</pallas_src>

<mosaic_0001>
module attributes {stable_mosaic.version = 11 : i64} {
  func.func @_qkv_proj_kernel(%arg0: i32, %arg1: i32, %arg2: memref<1x64x128xf32, #tpu.memory_space<vmem>>, %arg3: memref<128x384xbf16, #tpu.memory_space<vmem>>, %arg4: memref<1x384xf32, #tpu.memory_space<vmem>>, %arg5: memref<1x64x128xbf16, #tpu.memory_space<vmem>>, %arg6: memref<1x64x128xbf16, #tpu.memory_space<vmem>>, %arg7: memref<1x64x128xbf16, #tpu.memory_space<vmem>>) attributes {dimension_semantics = [#tpu.dimension_semantics<parallel>, #tpu.dimension_semantics<parallel>], iteration_bounds = array<i64: 2, 1>, scalar_prefetch = 0 : i64, scratch_operands = 0 : i64, tpu.core_type = #tpu.core_type<tc>, window_params = [{transform_indices = @transform_0, window_bounds = array<i64: 1, 64, 128>}, {pipeline_mode = #tpu.pipeline_mode<synchronous>, transform_indices = @transform_1, window_bounds = array<i64: 128, 384>}, {pipeline_mode = #tpu.pipeline_mode<synchronous>, transform_indices = @transform_2, window_bounds = array<i64: 1, 384>}, {transform_indices = @transform_3, window_bounds = array<i64: 1, 64, 128>}, {transform_indices = @transform_4, window_bounds = array<i64: 1, 64, 128>}, {transform_indices = @transform_5, window_bounds = array<i64: 1, 64, 128>}]} {
    %c0 = arith.constant 0 : index
    %c0_0 = arith.constant 0 : index
    %c0_1 = arith.constant 0 : index
    %0 = vector.load %arg2[%c0, %c0_0, %c0_1] : memref<1x64x128xf32, #tpu.memory_space<vmem>>, vector<1x64x128xf32>
    %1 = vector.shape_cast %0 : vector<1x64x128xf32> to vector<64x128xf32>
    %2 = arith.truncf %1 : vector<64x128xf32> to vector<64x128xbf16>
    %c0_2 = arith.constant 0 : index
    %c0_3 = arith.constant 0 : index
    %3 = vector.load %arg3[%c0_2, %c0_3] : memref<128x384xbf16, #tpu.memory_space<vmem>>, vector<128x384xbf16>
    %cst = arith.constant dense<0.000000e+00> : vector<64x384xf32>
    %4 = tpu.matmul %2, %3, %cst {dimension_numbers = #tpu.dot_dimension_numbers<[1], [0], [0], [1], [0, 0, 1, 1], [], []>} : vector<64x128xbf16>, vector<128x384xbf16>, vector<64x384xf32> -> vector<64x384xf32>
    %c0_4 = arith.constant 0 : index
    %c0_5 = arith.constant 0 : index
    %5 = vector.load %arg4[%c0_4, %c0_5] : memref<1x384xf32, #tpu.memory_space<vmem>>, vector<1x384xf32>
    %6 = vector.broadcast %5 : vector<1x384xf32> to vector<64x384xf32>
    %7 = arith.addf %4, %6 : vector<64x384xf32>
    %8 = arith.truncf %7 : vector<64x384xf32> to vector<64x384xbf16>
    %9 = vector.extract_strided_slice %8 {offsets = [0, 0], sizes = [64, 128], strides = [1, 1]} : vector<64x384xbf16> to vector<64x128xbf16>
    %c0_6 = arith.constant 0 : index
    %c0_7 = arith.constant 0 : index
    %c0_8 = arith.constant 0 : index
    %10 = vector.load %arg5[%c0_6, %c0_7, %c0_8] : memref<1x64x128xbf16, #tpu.memory_space<vmem>>, vector<1x64x128xbf16>
    %11 = vector.shape_cast %10 : vector<1x64x128xbf16> to vector<64x128xbf16>
    %12 = vector.shape_cast %9 : vector<64x128xbf16> to vector<1x64x128xbf16>
    tpu.vector_store %arg5[%c0_6, %c0_7, %c0_8], %12 {strides = array<i32>} : memref<1x64x128xbf16, #tpu.memory_space<vmem>>, vector<1x64x128xbf16>,
    %13 = vector.extract_strided_slice %8 {offsets = [0, 128], sizes = [64, 128], strides = [1, 1]} : vector<64x384xbf16> to vector<64x128xbf16>
    %c0_9 = arith.constant 0 : index
    %c0_10 = arith.constant 0 : index
    %c0_11 = arith.constant 0 : index
    %14 = vector.load %arg6[%c0_9, %c0_10, %c0_11] : memref<1x64x128xbf16, #tpu.memory_space<vmem>>, vector<1x64x128xbf16>
    %15 = vector.shape_cast %14 : vector<1x64x128xbf16> to vector<64x128xbf16>
    %16 = vector.shape_cast %13 : vector<64x128xbf16> to vector<1x64x128xbf16>
    tpu.vector_store %arg6[%c0_9, %c0_10, %c0_11], %16 {strides = array<i32>} : memref<1x64x128xbf16, #tpu.memory_space<vmem>>, vector<1x64x128xbf16>,
    %17 = vector.extract_strided_slice %8 {offsets = [0, 256], sizes = [64, 128], strides = [1, 1]} : vector<64x384xbf16> to vector<64x128xbf16>
    %c0_12 = arith.constant 0 : index
    %c0_13 = arith.constant 0 : index
    %c0_14 = arith.constant 0 : index
    %18 = vector.load %arg7[%c0_12, %c0_13, %c0_14] : memref<1x64x128xbf16, #tpu.memory_space<vmem>>, vector<1x64x128xbf16>
    %19 = vector.shape_cast %18 : vector<1x64x128xbf16> to vector<64x128xbf16>
    %20 = vector.shape_cast %17 : vector<64x128xbf16> to vector<1x64x128xbf16>
    tpu.vector_store %arg7[%c0_12, %c0_13, %c0_14], %20 {strides = array<i32>} : memref<1x64x128xbf16, #tpu.memory_space<vmem>>, vector<1x64x128xbf16>,
    return
  }
  func.func @transform_0(%arg0: i32, %arg1: i32) -> (i32, i32, i32) {
    %c0_i32 = arith.constant 0 : i32
    %c0_i32_0 = arith.constant 0 : i32
    return %arg0, %arg1, %c0_i32 : i32, i32, i32
  }
  func.func @transform_1(%arg0: i32, %arg1: i32) -> (i32, i32) {
    %c0_i32 = arith.constant 0 : i32
    %c0_i32_0 = arith.constant 0 : i32
    %c0_i32_1 = arith.constant 0 : i32
    return %c0_i32, %c0_i32_0 : i32, i32
  }
  func.func @transform_2(%arg0: i32, %arg1: i32) -> (i32, i32) {
    %c0_i32 = arith.constant 0 : i32
    %c0_i32_0 = arith.constant 0 : i32
    %c0_i32_1 = arith.constant 0 : i32
    return %c0_i32, %c0_i32_0 : i32, i32
  }
  func.func @transform_3(%arg0: i32, %arg1: i32) -> (i32, i32, i32) {
    %c0_i32 = arith.constant 0 : i32
    %c0_i32_0 = arith.constant 0 : i32
    return %arg0, %arg1, %c0_i32 : i32, i32, i32
  }
  func.func @transform_4(%arg0: i32, %arg1: i32) -> (i32, i32, i32) {
    %c0_i32 = arith.constant 0 : i32
    %c0_i32_0 = arith.constant 0 : i32
    return %arg0, %arg1, %c0_i32 : i32, i32, i32
  }
  func.func @transform_5(%arg0: i32, %arg1: i32) -> (i32, i32, i32) {
    %c0_i32 = arith.constant 0 : i32
    %c0_i32_0 = arith.constant 0 : i32
    return %arg0, %arg1, %c0_i32 : i32, i32, i32
  }
}

</mosaic_0001>

<bundles_post_ra>
// kernel: tpu_custom_call.1
= control target key start
LH: loop header
LB: loop body
LE: loop exit
PB: predicated region body
PF: predicated region fallthrough
CT: control target
= control target key end

     0   :  { %s1907_s0 = inlined_call_operand.hbm [shape: f32[2,64,128], index: 0, kind: input, shape index: {}]   ;;  %s1908_s1 = inlined_call_operand.hbm [shape: bf16[128,384], index: 1, kind: input, shape index: {}]   ;;  %s1909_s2 = inlined_call_operand.vmem [shape: f32[1,384], index: 2, kind: input, shape index: {}]   ;;  %s1910_s3 = inlined_call_operand.hbm [shape: bf16[2,64,128], index: 3, kind: output, shape index: {0}]   ;;  %s1911_s4 = inlined_call_operand.hbm [shape: bf16[2,64,128], index: 4, kind: output, shape index: {1}]   ;;  %s1912_s5 = inlined_call_operand.hbm [shape: bf16[2,64,128], index: 5, kind: output, shape index: {2}]  }
   0x1   :  { %1917 = sst [smem:[#allocation15_spill]] %s1907_s0 }
   0x2   :  { %1918 = sst [smem:[#allocation16_spill]] %s1908_s1 }
   0x3   :  { %1919 = sst [smem:[#allocation17_spill]] %s1909_s2 }
   0x4   :  { %11 = vsyncpa [#allocation3], 0 }
   0x5   :  { %13 = vsyncpa [#allocation3 + $0x1], 0 }
   0x6   :  { %14 = vsyncpa [#allocation6], 0 }
   0x7   :  { %15 = vsyncpa [#allocation4], 0 }
   0x8   :  { %17 = vsyncpa [#allocation4 + $0x1], 0 }
   0x9   :  { %18 = vsyncpa [#allocation9], 0 }
   0xa   :  { %20 = vsyncpa [#allocation9 + $0x1], 0  ;;  %s1552_s18 = smov 0   ;;  %s1554_s19 = smov 0  }
   0xb   :  { %s1556_s20 = smov 0   ;;  %s1558_s21 = smov 0  }
   0xc   :  { %s1560_s22 = smov 0   ;;  %s1562_s23 = smov 0  }
   0xd LB: > { %s1583_s24 = sadd.s32 4294967295, %s1508_s23   ;;  %s1916_s25 = sadd.s32 4294967294, %s1508_s23   ;;  %s1508_s23 = sphi %s1562_s23, %s26_s23   ;;  %s1504_s22 = sphi %s1560_s22, %s1943_s22   ;;  %s1500_s21 = sphi %s1558_s21, %s1942_s21   ;;  %s1496_s20 = sphi %s1556_s20, %s1941_s20   ;;  %s1492_s19 = sphi %s1554_s19, %s1940_s19   ;;  %s1488_s18 = sphi %s1552_s18, %s1939_s18  }
   0xe   : > { %p60_p0 = scmp.ne.s32.totalorder %s1492_s19, %s1488_s18  ;;  %p1913_p1 = scmp.eq.s32.totalorder %s1583_s24, 0 }
   0xf   : > { %p134_p3 = scmp.eq.s32.totalorder %s1916_s25, 1  ;;  %p978_p5 = scmp.ge.s32.totalorder %s1508_s23, 1 }
  0x10   : > { %p1594_p4 = por %p1913_p1, %p60_p0  ;;  %p197_p7 = scmp.lt.s32.totalorder %s1508_s23, 3 }
  0x11   : > { %p1599_p6 = por %p134_p3, %p60_p0  ;;  %s1510_s29 = smov [#allocation5]  }
  0x12   : > { %s1920_s26 = scalar_select %p1594_p4, 1, 0 }
  0x13   : > { %s1921_s27 = scalar_select %p1599_p6, 1, 0 }
  0x14   : > { %p1604_p8 = pnand %p978_p5, %p197_p7  ;;  %s209_s30 = sshll.u32 %s1510_s29, 4  ;;  %s210_s30 = int_to_ptr.vmem [resolvable:$true] %s209_s30 }
  0x15   : > { %s38_s7 = sadd.s32 1, %s1504_s22  ;;  %s1924_s1 = sld [smem:[#allocation16_spill]] }
  0x16   : > { %s1922_s28 = scalar_select %p1604_p8, 1, 0 }
  0x17   : > { %p1194_p9 = pneg %p1604_p8 }
  0x19   : > { %p1613_p11 = pnand %p1194_p9, %p1913_p1 }
  0x1b   : > { %s1304_s10 = scalar_lea.hbm %s1924_s1, 3072  ;;  %p1306_p13 = pneg %p1613_p11 }
  0x1c   : > { %p1305_p12 = scmp.ne.s32.totalorder %s1924_s1, %s1304_s10  ;;  %p1311_p5 = scmp.lt.u32.totalorder %s1304_s10, %s1924_s1 }
  0x1e   : > { %p1307_p0 = pnand %p1306_p13, %p1305_p12 }
  0x20   : > { %p1308_p3 = pneg %p1307_p0 }
  0x22   : > { %p1313_p7 = pnand %p1311_p5, %p1308_p3 }
  0x24   : > { %1316 = shalt.err (!%p1313_p7)
}
  0x25   : > { %s1317_s15 = scalar_lea.vmem %s210_s30, 3072  ;;  %p1325_p2 = scmp.lt.s32.totalorder %s210_s30, %s210_s30 }
  0x26   : > { %p1318_p9 = scmp.ne.s32.totalorder %s210_s30, %s1317_s15  ;;  %p1326_p6 = scmp.lt.s32.totalorder %s1317_s15, %s1317_s15 }
  0x28   : > { %p1320_p10 = pnand %p1318_p9, %p1306_p13  ;;  %p1327_p4 = por %p1326_p6, %p1325_p2 }
  0x2a   : > { %p1321_p1 = pneg %p1320_p10 }
  0x2c   : > { %p1328_p8 = pnand %p1327_p4, %p1321_p1 }
  0x2e   : > { %1331 = shalt.err (!%p1328_p8)
}
  0x2f   : > { %s1511_s16 = smov 192   ;;  %s1512_s17 = smov 12  }
  0x30   : > { %1197 = dma.hbm_to_vmem [thread:$0]  (!%p1613_p11), %s1924_s1, 3072, %s210_s30, [#allocation6], %s1511_s16, %s1511_s16, %s1512_s17  }
  0x31   : > { %p40_p1 = scmp.ge.s32.totalorder %s38_s7, 2  ;;  %s47_s9 = sadd.s32 1, %s1496_s20 }
  0x32   : > { %p54_p2 = scmp.ne.s32.totalorder %s1496_s20, %s1492_s19  ;;  %p55_p4 = scmp.eq.s32.totalorder %s1508_s23, 0 }
  0x33   : > { %s1945_s7 = smov (%p40_p1, %s38_s7), 0  ;;  %p1926_p8 = scmp.eq.s32.totalorder %s1583_s24, 1 }
  0x34   : > { %p1640_p6 = por %p55_p4, %p54_p2  ;;  %s42_s6 = ssub.s32 %s1504_s22, %s1945_s7 }
  0x35   : > { %p1646_p10 = por %p1926_p8, %p54_p2  ;;  %p1213_p12 = scmp.lt.s32.totalorder %s1508_s23, 2 }
  0x36   : > { %p45_p11 = scmp.eq.s32.totalorder %s42_s6, 0  ;;  %s226_s30 = sand.u32 1, %s1496_s20  }
  0x37   : > { %s981_s12 = sshll.u32 %s226_s30, 6  ;;  %s1049_s14 = sshll.u32 %s1504_s22, 10 }
  0x38   : > { %s1655_s13 = scalar_select %p45_p11, %s1496_s20, %s47_s9  }
  0x39   : > { %s1928_s0 = sld [smem:[#allocation15_spill]]  ;;  %s230_s29 = scalar_lea.vmem [#allocation2], %s981_s12 }
  0x3a   : > { %s239_s8 = sshll.u32 %s230_s29, 4  ;;  %p1667_p13 = pnand %p1213_p12, %p1640_p6  ;;  %s1663_s8 = int_to_ptr.vmem [resolvable:$true] %s239_s8 }
  0x3b   : > { %s1671_s9 = scalar_lea.sflag [#allocation3], %s226_s30 }
  0x3c   : > { %p1334_p3 = pneg %p1667_p13 }
  0x3f   : > { %s1661_s17 = scalar_lea.hbm %s1928_s0, %s1049_s14  ;;  %s1337_s10 = scalar_lea.hbm %s1928_s0, 2048 }
  0x40   : > { %s1332_s15 = scalar_lea.hbm %s1661_s17, 1024  ;;  %p1338_p9 = scmp.lt.u32.totalorder %s1661_s17, %s1928_s0 }
  0x41   : > { %p1333_p0 = scmp.ne.s32.totalorder %s1661_s17, %s1332_s15  ;;  %p1339_p1 = scmp.lt.u32.totalorder %s1337_s10, %s1332_s15 }
  0x42   : > { %p1341_p4 = scmp.lt.u32.totalorder %s1332_s15, %s1661_s17 }
  0x43   : > { %p1335_p5 = pnand %p1334_p3, %p1333_p0  ;;  %p1340_p2 = por %p1339_p1, %p1338_p9 }
  0x45   : > { %p1336_p7 = pneg %p1335_p5  ;;  %p1342_p6 = por %p1341_p4, %p1340_p2 }
  0x47   : > { %p1343_p8 = pnand %p1342_p6, %p1336_p7 }
  0x49   : > { %1346 = shalt.err (!%p1343_p8)
}
  0x4a   : > { %s1347_s30 = scalar_lea.vmem %s1663_s8, 1024  ;;  %s1513_s12 = smov [#allocation2]  }
  0x4b   : > { %p1348_p12 = scmp.ne.s32.totalorder %s1663_s8, %s1347_s30  ;;  %s1352_s14 = sshll.u32 %s1513_s12, 4  ;;  %s1353_s14 = int_to_ptr.vmem [resolvable:$false] %s1352_s14 }
  0x4c   : > { %s1354_s16 = scalar_lea.vmem %s1353_s14, 2048  ;;  %p1355_p5 = scmp.lt.s32.totalorder %s1663_s8, %s1353_s14 }
  0x4d   : > { %p1350_p11 = pnand %p1348_p12, %p1334_p3  ;;  %p1356_p9 = scmp.lt.s32.totalorder %s1354_s16, %s1347_s30 }
  0x4f   : > { %p1351_p0 = pneg %p1350_p11  ;;  %p1357_p1 = por %p1356_p9, %p1355_p5 }
  0x51   : > { %p1358_p2 = pnand %p1357_p1, %p1351_p0 }
  0x53   : > { %1361 = shalt.err (!%p1358_p2)
}
  0x54   : > { %s1514_s15 = smov 128   ;;  %s1515_s10 = smov 8  }
  0x55   : > { %1201 = dma.hbm_to_vmem [thread:$0]  (!%p1667_p13), %s1661_s17, 1024, %s1663_s8, %s1671_s9, %s1514_s15, %s1514_s15, %s1515_s10  }
  0x56   : > { %p1930_p3 = scmp.ne.s32.totalorder %s1922_s28, 0 }
  0x57   : > { %s1702_s29 = sand.u32 (!%p1930_p3), 1, %s1492_s19   ;;  %p1931_p7 = scmp.ne.s32.totalorder (!%p1930_p3), %s1920_s26, 0 }
  0x58   : > { %251 = sbr.rel (%p1930_p3) target bundleno = 436 (0x1b4), region = 32  ;;  %s985_s30 = sshll.u32 (!%p1930_p3), %s1702_s29, 6 }
  0x59   : > { %s254_s12 = scalar_lea.sflag (!%p1930_p3), [#allocation3], %s1702_s29  ;;  %s1706_s14 = scalar_lea.vmem (!%p1930_p3), [#allocation2], %s985_s30 }
  0x5f   : > { %1471 = dma.done.wait (%p1931_p7), %s254_s12, 1024  }
  0x60   : > { %1473 = vsyncadd (%p1931_p7), %s254_s12, 4294966272  ;;  %p1932_p13 = scmp.eq.s32.totalorder %s1583_s24, 0 }
  0x62   : > { %1475 = dma.done.wait (%p1932_p13), [#allocation6], 3072   ;;  %p1933_p4 = pmov %p1932_p13 }
  0x63   : > { %v1516_v0 = vmov 0   ;;  %v1272_v1 = vld [vmem:[#allocation5 + $0x4] ss:$12 sps:$4 sm:$0xff]   ;;  %v1274_v2 = vld [vmem:[#allocation5] ss:$12 sps:$4 sm:$0xff]   ;;  %v306_v29 = vld [vmem:[%s1706_s14 + $0x18] sm:$0xff]  ;;  %v349_v37 = vlaneseq }
  0x64   : > { %1477 = vsyncadd (%p1933_p4), [#allocation6], 4294964224  ;;  %524 = vmatprep.mubr.bf16.mxu0 %v1516_v0  ;;  %492 = vmatprep.subr.bf16.mxu0 %v1272_v1  ;;  %v1275_v3 = vld [vmem:[#allocation5 + $0x1c] ss:$12 sps:$4 sm:$0xff]   ;;  %v1277_v4 = vld [vmem:[#allocation5 + $0x18] ss:$12 sps:$4 sm:$0xff]  }
  0x65   : > { %493 = vmatpush1.bf16.msra.mxu0 %v1274_v2  ;;  %v1278_v5 = vld [vmem:[#allocation5 + $0x34] ss:$12 sps:$4 sm:$0xff]   ;;  %v1280_v7 = vld [vmem:[#allocation5 + $0x30] ss:$12 sps:$4 sm:$0xff]   ;;  %v1281_v8 = vld [vmem:[#allocation5 + $0x4c] ss:$12 sps:$4 sm:$0xff]  }
  0x66   : > { %494 = vmatprep.subr.bf16.mxu0 %v1275_v3  ;;  %v1284_v6 = vld [vmem:[#allocation5 + $0x8] ss:$12 sps:$4 sm:$0xff]   ;;  %v1288_v9 = vld [vmem:[#allocation5 + $0x20] ss:$12 sps:$4 sm:$0xff]   ;;  %v1292_v10 = vld [vmem:[#allocation5 + $0x38] ss:$12 sps:$4 sm:$0xff]  }
  0x67   : > { %1158 = vmatprep.subr.bf16.mxu1 %v1284_v6  ;;  %v1283_v11 = vld [vmem:[#allocation5 + $0x48] ss:$12 sps:$4 sm:$0xff]   ;;  %v1285_v12 = vld [vmem:[#allocation5 + $0x64] ss:$12 sps:$4 sm:$0xff]   ;;  %v1287_v13 = vld [vmem:[#allocation5 + $0x60] ss:$12 sps:$4 sm:$0xff]  }
  0x68   : > { %1159 = vmatpush3.bf16.msra.mxu1 %v1284_v6  ;;  %v1296_v14 = vld [vmem:[#allocation5 + $0x50] ss:$12 sps:$4 sm:$0xff]   ;;  %v303_v16 = vld [vmem:[%s1706_s14] sm:$0xff]  ;;  %v304_v17 = vld [vmem:[%s1706_s14 + $0x8] sm:$0xff]  ;;  %v350_v38 = vshrl.u32 %v349_v37, 7  ;;  %s1934_s2 = sld [smem:[#allocation17_spill]] }
  0x69   : > { %495 = vmatpush1.bf16.msra.mxu0 %v1277_v4  ;;  %1160 = vmatprep.subr.bf16.mxu1 %v1288_v9  ;;  %v1289_v15 = vld [vmem:[#allocation5 + $0x7c] ss:$12 sps:$4 sm:$0xff]   ;;  %v311_v18 = vpack.c.bf16 %v304_v17, %v303_v16  ;;  %v1291_v20 = vld [vmem:[#allocation5 + $0x78] ss:$12 sps:$4 sm:$0xff]   ;;  %v1293_v21 = vld [vmem:[#allocation5 + $0x94] ss:$12 sps:$4 sm:$0xff]  }
  0x6a   : > { %496 = vmatprep.subr.bf16.mxu0 %v1278_v5  ;;  %v1300_v19 = vld [vmem:[#allocation5 + $0x68] ss:$12 sps:$4 sm:$0xff]   ;;  %v1301_v22 = vld [vmem:[#allocation5 + $0x80] ss:$12 sps:$4 sm:$0xff]   ;;  %v1295_v23 = vld [vmem:[#allocation5 + $0x90] ss:$12 sps:$4 sm:$0xff]  }
  0x6b   : > { %1174 = vmatprep.mubr.bf16.mxu1 %v311_v18  ;;  %v1297_v24 = vld [vmem:[#allocation5 + $0xac] ss:$12 sps:$4 sm:$0xff]   ;;  %v1299_v26 = vld [vmem:[#allocation5 + $0xa8] ss:$12 sps:$4 sm:$0xff]   ;;  %v1303_v27 = vld [vmem:[#allocation5 + $0xb0] ss:$12 sps:$4 sm:$0xff]  }
  0x6c   : > { %1161 = vmatpush3.bf16.msra.mxu1 %v1288_v9  ;;  %v1302_v25 = vld [vmem:[#allocation5 + $0x98] ss:$12 sps:$4 sm:$0xff]   ;;  %v305_v28 = vld [vmem:[%s1706_s14 + $0x10] sm:$0xff]  ;;  %v308_v31 = vld [vmem:[%s1706_s14 + $0x28] sm:$0xff]  ;;  %v351_v39 = vsub.s32 0, %v350_v38  ;;  %v355_v41 = vsub.s32 1, %v350_v38 }
  0x6d   : > { %497 = vmatpush1.bf16.msra.mxu0 %v1280_v7  ;;  %1162 = vmatprep.subr.bf16.mxu1 %v1292_v10  ;;  %v307_v30 = vld [vmem:[%s1706_s14 + $0x20] sm:$0xff]  ;;  %v312_v32 = vpack.c.bf16 %v306_v29, %v305_v28  ;;  %v309_v34 = vld [vmem:[%s1706_s14 + $0x30] sm:$0xff]  ;;  %v310_v35 = vld [vmem:[%s1706_s14 + $0x38] sm:$0xff]  ;;  %v359_v43 = vsub.s32 2, %v350_v38  ;;  %s1736_s17 = sshll.u32 %s1702_s29, 5  ;;  %s1074_s10 = sshll.u32 %s1500_s21, 9 }
  0x6e   : > { %498 = vmatprep.subr.bf16.mxu0 %v1281_v8  ;;  %v313_v33 = vpack.c.bf16 %v308_v31, %v307_v30  ;;  %v314_v36 = vpack.c.bf16 %v310_v35, %v309_v34  ;;  %v347_v40 = vld [vmem:[%s1934_s2] sm:$0x7]  ;;  %s1743_s8 = scalar_lea.vmem [#allocation7], %s1736_s17  ;;  %s1747_s6 = scalar_lea.vmem [#allocation8], %s1736_s17 }
  0x6f   : > { %v1731_v42 = vrot.slane %v347_v40, %v351_v39  ;;  %v1733_v45 = vrot.slane %v347_v40, %v355_v41  ;;  %v360_v51 = vrot.slane %v347_v40, %v359_v43  ;;  %s1755_s9 = scalar_lea.vmem [#allocation10], %s1736_s17  ;;  %s776_s16 = sshll.u32 %s1743_s8, 4  ;;  %s1771_s16 = int_to_ptr.vmem [resolvable:$true] %s776_s16 }
  0x70   : > { %1163 = vmatpush3.bf16.msra.mxu1 %v1292_v10  ;;  %s794_s15 = sshll.u32 %s1747_s6, 4  ;;  %s812_s30 = sshll.u32 %s1755_s9, 4  ;;  %s1773_s15 = int_to_ptr.vmem [resolvable:$true] %s794_s15  ;;  %s1792_s30 = int_to_ptr.vmem [resolvable:$true] %s812_s30 }
  0x71   : > { %499 = vmatpush1.bf16.msra.mxu0 %v1283_v11  ;;  %1164 = vmatprep.subr.bf16.mxu1 %v1296_v14  ;;  %s1785_s21 = scalar_lea.hbm %s1910_s3, %s1074_s10  ;;  %s1798_s0 = scalar_lea.hbm %s1912_s5, %s1074_s10 }
  0x72   : > { %500 = vmatprep.subr.bf16.mxu0 %v1285_v12  ;;  %s751_s1 = scalar_lea.sflag [#allocation4], %s1702_s29  ;;  %s1362_s14 = scalar_lea.vmem %s1771_s16, 512 }
  0x73   : > { %p1363_p6 = scmp.ne.s32.totalorder %s1771_s16, %s1362_s14  ;;  %s1517_s26 = smov [#allocation7]  }
  0x74   : > { %1165 = vmatpush3.bf16.msra.mxu1 %v1296_v14  ;;  %s1366_s2 = sshll.u32 %s1517_s26, 4  ;;  %s1367_s2 = int_to_ptr.vmem [resolvable:$false] %s1366_s2 }
  0x75   : > { %501 = vmatpush1.bf16.msra.mxu0 %v1287_v13  ;;  %1166 = vmatprep.subr.bf16.mxu1 %v1300_v19  ;;  %p1364_p8 = pnand %p1363_p6, %p1646_p10  ;;  %s1368_s28 = scalar_lea.vmem %s1367_s2, 1024 }
  0x76   : > { %502 = vmatprep.subr.bf16.mxu0 %v1289_v15  ;;  %p1369_p11 = scmp.lt.s32.totalorder %s1771_s16, %s1367_s2  ;;  %p1370_p0 = scmp.lt.s32.totalorder %s1368_s28, %s1362_s14 }
  0x77   : > { %p1365_p12 = pneg %p1364_p8 }
  0x78   : > { %1167 = vmatpush3.bf16.msra.mxu1 %v1300_v19  ;;  %p1371_p5 = por %p1370_p0, %p1369_p11 }
  0x79   : > { %503 = vmatpush1.bf16.msra.mxu0 %v1291_v20  ;;  %1168 = vmatprep.subr.bf16.mxu1 %v1301_v22 }
  0x7a   : > { %504 = vmatprep.subr.bf16.mxu0 %v1293_v21  ;;  %p1372_p9 = pnand %p1371_p5, %p1365_p12 }
  0x7c   : > { %1169 = vmatpush3.bf16.msra.mxu1 %v1301_v22 }
  0x7d   : > { %505 = vmatpush1.bf16.msra.mxu0 %v1295_v23  ;;  %1170 = vmatprep.subr.bf16.mxu1 %v1302_v25 }
  0x7e   : > { %506 = vmatprep.subr.bf16.mxu0 %v1297_v24 }
  0x80   : > { %1171 = vmatpush3.bf16.msra.mxu1 %v1302_v25 }
  0x81   : > { %507 = vmatpush1.bf16.msra.mxu0 %v1299_v26  ;;  %1172 = vmatprep.subr.bf16.mxu1 %v1303_v27 }
  0x84   : > { %525 = vmatmul.mubr.bf16.vlgmr.msra.gmra.mrb[0].mxu0 %v311_v18  ;;  %1173 = vmatpush3.bf16.msra.mxu1 %v1303_v27 }
  0x85   : > { %534 = vmatprep.mubr.bf16.mxu0 %v1516_v0 }
  0x87   : > { %1175 = vmatmul.mubr.bf16.vlgmr.msra.gmra.mrb[0].mxu1 %v312_v32 }
  0x88   : > { %1178 = vmatprep.mubr.bf16.mxu1 %v313_v33 }
  0x8c   : > { %535 = vmatmul.mubr.bf16.gmra.mrb[4].mxu0 %v312_v32 }
  0x8d   : > { %544 = vmatprep.mubr.bf16.mxu0 %v1516_v0 }
  0x8f   : > { %1179 = vmatmul.mubr.bf16.gmra.mrb[4].mxu1 %v314_v36 }
  0x94   : > { %545 = vmatmul.mubr.bf16.gmra.mrb[8].mxu0 %v313_v33 }
  0x95   : > { %554 = vmatprep.mubr.bf16.mxu0 %v1516_v0 }
  0x9c   : > { %555 = vmatmul.mubr.bf16.gmra.mrb[12].mxu0 %v314_v36 }
 0x157   : > { %v526_v44 = vpop.f32.mrb[0].mxu0 }
 0x158   : > { %v528_v46 = vpop.f32.mrb[1].mxu0  ;;  %v527_v48 = vadd.f32 %v526_v44, %v1731_v42 }
 0x159   : > { %v530_v47 = vpop.f32.mrb[2].mxu0  ;;  %v529_v52 = vadd.f32 %v528_v46, %v1733_v45 }
 0x15a   : > { %v531_v49 = vadd.f32 %v530_v47, %v1731_v42  ;;  %v532_v50 = vpop.f32.mrb[3].mxu0  ;;  %v1176_v56 = vpop.f32.mrb[0].mxu1 }
 0x15b   : > { %v533_v53 = vadd.f32 %v532_v50, %v1733_v45  ;;  %v608_v57 = vadd.f32 %v1176_v56, %v360_v51  ;;  %v599_v58 = vpop.f32.mrb[1].mxu1 }
 0x15c   : > { %v1080_v54 = vpack.c.bf16 %v531_v49, %v527_v48  ;;  %v600_v60 = vadd.f32 %v599_v58, %v360_v51  ;;  %v1177_v61 = vpop.f32.mrb[2].mxu1 }
 0x15d   : > { %v1100_v55 = vpack.c.bf16 %v533_v53, %v529_v52  ;;  %v611_v63 = vadd.f32 %v1177_v61, %v360_v51  ;;  %v602_v0 = vpop.f32.mrb[3].mxu1 }
 0x15e   : > { %1081 = vst [vmem:[%s1743_s8] sm:$0xff] %v1080_v54   ;;  %v603_v2 = vadd.f32 %v602_v0, %v360_v51 }
 0x15f   : > { %1101 = vst [vmem:[%s1747_s6] sm:$0xff] %v1100_v55   ;;  %v536_v59 = vpop.f32.mrb[4].mxu0  ;;  %v1125_v6 = vpack.c.bf16 %v611_v63, %v608_v57 }
 0x160   : > { %v538_v62 = vpop.f32.mrb[5].mxu0  ;;  %v537_v3 = vadd.f32 %v536_v59, %v1731_v42  ;;  %v1120_v9 = vpack.c.bf16 %v603_v2, %v600_v60 }
 0x161   : > { %v540_v1 = vpop.f32.mrb[6].mxu0  ;;  %v539_v7 = vadd.f32 %v538_v62, %v1733_v45  ;;  %1143 = vst [vmem:[%s1755_s9 + $0x8] sm:$0xff] %v1125_v6  }
 0x162   : > { %v541_v4 = vadd.f32 %v540_v1, %v1731_v42  ;;  %v542_v5 = vpop.f32.mrb[7].mxu0  ;;  %1121 = vst [vmem:[%s1755_s9] sm:$0xff] %v1120_v9   ;;  %v1180_v12 = vpop.f32.mrb[4].mxu1 }
 0x163   : > { %v543_v8 = vadd.f32 %v542_v5, %v1733_v45  ;;  %v624_v13 = vadd.f32 %v1180_v12, %v360_v51  ;;  %v615_v14 = vpop.f32.mrb[5].mxu1 }
 0x164   : > { %v1085_v10 = vpack.c.bf16 %v541_v4, %v537_v3  ;;  %v616_v16 = vadd.f32 %v615_v14, %v360_v51  ;;  %v1181_v17 = vpop.f32.mrb[6].mxu1 }
 0x165   : > { %v1105_v11 = vpack.c.bf16 %v543_v8, %v539_v7  ;;  %v627_v19 = vadd.f32 %v1181_v17, %v360_v51  ;;  %v618_v20 = vpop.f32.mrb[7].mxu1 }
 0x166   : > { %1137 = vst [vmem:[%s1743_s8 + $0x8] sm:$0xff] %v1085_v10   ;;  %v619_v22 = vadd.f32 %v618_v20, %v360_v51 }
 0x167   : > { %1140 = vst [vmem:[%s1747_s6 + $0x8] sm:$0xff] %v1105_v11   ;;  %v546_v15 = vpop.f32.mrb[8].mxu0  ;;  %v1135_v26 = vpack.c.bf16 %v627_v19, %v624_v13 }
 0x168   : > { %v548_v18 = vpop.f32.mrb[9].mxu0  ;;  %v547_v23 = vadd.f32 %v546_v15, %v1731_v42  ;;  %v1130_v29 = vpack.c.bf16 %v619_v22, %v616_v16 }
 0x169   : > { %v550_v21 = vpop.f32.mrb[10].mxu0  ;;  %v549_v27 = vadd.f32 %v548_v18, %v1733_v45  ;;  %1145 = vst [vmem:[%s1755_s9 + $0x18] sm:$0xff] %v1135_v26  }
 0x16a   : > { %v551_v24 = vadd.f32 %v550_v21, %v1731_v42  ;;  %v552_v25 = vpop.f32.mrb[11].mxu0  ;;  %1144 = vst [vmem:[%s1755_s9 + $0x10] sm:$0xff] %v1130_v29   ;;  %s1790_s9 = scalar_lea.hbm %s1911_s4, %s1074_s10 }
 0x16b   : > { %v553_v28 = vadd.f32 %v552_v25, %v1733_v45 }
 0x16c   : > { %v1090_v30 = vpack.c.bf16 %v551_v24, %v547_v23 }
 0x16d   : > { %v1110_v31 = vpack.c.bf16 %v553_v28, %v549_v27 }
 0x16e   : > { %1138 = vst [vmem:[%s1743_s8 + $0x10] sm:$0xff] %v1090_v30  }
 0x16f   : > { %1141 = vst [vmem:[%s1747_s6 + $0x10] sm:$0xff] %v1110_v31   ;;  %v556_v32 = vpop.f32.mrb[12].mxu0 }
 0x170   : > { %v558_v33 = vpop.f32.mrb[13].mxu0  ;;  %v557_v35 = vadd.f32 %v556_v32, %v1731_v42 }
 0x171   : > { %v560_v34 = vpop.f32.mrb[14].mxu0  ;;  %v559_v38 = vadd.f32 %v558_v33, %v1733_v45 }
 0x172   : > { %v561_v36 = vadd.f32 %v560_v34, %v1731_v42  ;;  %v562_v37 = vpop.f32.mrb[15].mxu0 }
 0x173   : > { %v563_v39 = vadd.f32 %v562_v37, %v1733_v45 }
 0x174   : > { %v1095_v40 = vpack.c.bf16 %v561_v36, %v557_v35 }
 0x175   : > { %v1115_v41 = vpack.c.bf16 %v563_v39, %v559_v38 }
 0x176   : > { %1139 = vst [vmem:[%s1743_s8 + $0x18] sm:$0xff] %v1095_v40  }
 0x177   : > { %1142 = vst [vmem:[%s1747_s6 + $0x18] sm:$0xff] %v1115_v41  }
 0x178   : > { %1375 = shalt.err (!%p1372_p9)
}
 0x179   : > { %s1376_s25 = scalar_lea.hbm %s1785_s21, 512  ;;  %s1380_s10 = scalar_lea.hbm %s1910_s3, 1024 }
 0x17a   : > { %p1377_p1 = scmp.ne.s32.totalorder %s1785_s21, %s1376_s25  ;;  %p1381_p7 = scmp.lt.u32.totalorder %s1785_s21, %s1910_s3 }
 0x17b   : > { %p1382_p13 = scmp.lt.u32.totalorder %s1380_s10, %s1376_s25  ;;  %p1384_p6 = scmp.lt.u32.totalorder %s1376_s25, %s1785_s21 }
 0x17c   : > { %p1378_p2 = pnand %p1377_p1, %p1646_p10 }
 0x17d   : > { %p1383_p4 = por %p1382_p13, %p1381_p7 }
 0x17e   : > { %p1379_p3 = pneg %p1378_p2 }
 0x17f   : > { %p1385_p8 = por %p1384_p6, %p1383_p4 }
 0x181   : > { %p1386_p12 = pnand %p1385_p8, %p1379_p3 }
 0x183   : > { %1389 = shalt.err (!%p1386_p12)
}
 0x184   : > { %s1518_s17 = smov 64   ;;  %s1519_s14 = smov 4  }
 0x185   : > { %1188 = dma.vmem_to_hbm [thread:$0]  (%p1646_p10), %s1771_s16, 512, %s1785_s21, %s751_s1, %s1518_s17, %s1518_s17, %s1519_s14  }
 0x186   : > { %s1935_s26 = sand.u32 1, %s1583_s24   ;;  %s1390_s25 = scalar_lea.vmem %s1773_s15, 512 }
 0x187   : > { %s1830_s28 = scalar_lea.sflag [#allocation9], %s1935_s26  ;;  %p1391_p11 = scmp.ne.s32.totalorder %s1773_s15, %s1390_s25 }
 0x188   : > { %s1520_s8 = smov [#allocation8]  }
 0x189   : > { %p1392_p0 = pnand %p1391_p11, %p1646_p10  ;;  %s1394_s6 = sshll.u32 %s1520_s8, 4  ;;  %s1395_s6 = int_to_ptr.vmem [resolvable:$false] %s1394_s6 }
 0x18a   : > { %s1396_s10 = scalar_lea.vmem %s1395_s6, 1024  ;;  %p1397_p9 = scmp.lt.s32.totalorder %s1773_s15, %s1395_s6 }
 0x18b   : > { %p1393_p5 = pneg %p1392_p0  ;;  %p1398_p1 = scmp.lt.s32.totalorder %s1396_s10, %s1390_s25 }
 0x18d   : > { %p1399_p2 = por %p1398_p1, %p1397_p9 }
 0x18f   : > { %p1400_p3 = pnand %p1399_p2, %p1393_p5 }
 0x191   : > { %1403 = shalt.err (!%p1400_p3)
}
 0x192   : > { %s1404_s1 = scalar_lea.hbm %s1790_s9, 512  ;;  %s1408_s16 = scalar_lea.hbm %s1911_s4, 1024 }
 0x193   : > { %p1405_p7 = scmp.ne.s32.totalorder %s1790_s9, %s1404_s1  ;;  %p1409_p6 = scmp.lt.u32.totalorder %s1790_s9, %s1911_s4 }
 0x194   : > { %p1410_p8 = scmp.lt.u32.totalorder %s1408_s16, %s1404_s1  ;;  %p1412_p11 = scmp.lt.u32.totalorder %s1404_s1, %s1790_s9 }
 0x195   : > { %p1406_p13 = pnand %p1405_p7, %p1646_p10 }
 0x196   : > { %p1411_p12 = por %p1410_p8, %p1409_p6 }
 0x197   : > { %p1407_p4 = pneg %p1406_p13 }
 0x198   : > { %p1413_p0 = por %p1412_p11, %p1411_p12 }
 0x19a   : > { %p1414_p5 = pnand %p1413_p0, %p1407_p4 }
 0x19c   : > { %1417 = shalt.err (!%p1414_p5)
}
 0x19d   : > { %1189 = dma.vmem_to_hbm [thread:$0]  (%p1646_p10), %s1773_s15, 512, %s1790_s9, %s1830_s28, %s1518_s17, %s1518_s17, %s1519_s14  }
 0x19e   : > { %s1418_s2 = scalar_lea.vmem %s1792_s30, 512  ;;  %s1521_s26 = smov [#allocation10]  }
 0x19f   : > { %p1419_p9 = scmp.ne.s32.totalorder %s1792_s30, %s1418_s2  ;;  %s1422_s25 = sshll.u32 %s1521_s26, 4  ;;  %s1423_s25 = int_to_ptr.vmem [resolvable:$false] %s1422_s25 }
 0x1a0   : > { %s1424_s8 = scalar_lea.vmem %s1423_s25, 1024  ;;  %p1425_p3 = scmp.lt.s32.totalorder %s1792_s30, %s1423_s25 }
 0x1a1   : > { %p1420_p1 = pnand %p1419_p9, %p1646_p10  ;;  %p1426_p7 = scmp.lt.s32.totalorder %s1424_s8, %s1418_s2 }
 0x1a3   : > { %p1421_p2 = pneg %p1420_p1  ;;  %p1427_p13 = por %p1426_p7, %p1425_p3 }
 0x1a5   : > { %p1428_p4 = pnand %p1427_p13, %p1421_p2 }
 0x1a7   : > { %1431 = shalt.err (!%p1428_p4)
}
 0x1a8   : > { %s1432_s15 = scalar_lea.hbm %s1798_s0, 512  ;;  %s1436_s10 = scalar_lea.hbm %s1912_s5, 1024 }
 0x1a9   : > { %p1433_p6 = scmp.ne.s32.totalorder %s1798_s0, %s1432_s15  ;;  %p1437_p11 = scmp.lt.u32.totalorder %s1798_s0, %s1912_s5 }
 0x1aa   : > { %p1438_p0 = scmp.lt.u32.totalorder %s1436_s10, %s1432_s15  ;;  %p1440_p9 = scmp.lt.u32.totalorder %s1432_s15, %s1798_s0 }
 0x1ab   : > { %p1434_p8 = pnand %p1433_p6, %p1646_p10 }
 0x1ac   : > { %p1439_p5 = por %p1438_p0, %p1437_p11 }
 0x1ad   : > { %p1435_p12 = pneg %p1434_p8 }
 0x1ae   : > { %p1441_p1 = por %p1440_p9, %p1439_p5 }
 0x1b0   : > { %p1442_p2 = pnand %p1441_p1, %p1435_p12 }
 0x1b2   : > { %1445 = shalt.err (!%p1442_p2)
}
 0x1b3   : > { %1190 = dma.vmem_to_hbm [thread:$0]  (%p1646_p10), %s1792_s30, 512, %s1798_s0, %s1830_s28, %s1518_s17, %s1518_s17, %s1519_s14  }
 0x1b4 PF: > { %s827_s29 = sand.u32 1, %s1488_s18   ;;  %p1936_p3 = scmp.ne.s32.totalorder %s1921_s27, 0 }
 0x1b5   : > { %p1937_p7 = scmp.ge.s32.totalorder %s1508_s23, 2  ;;  %s828_s16 = scalar_lea.sflag [#allocation4], %s827_s29 }
 0x1b7   : > { %p1203_p13 = pnand %p1937_p7, %p1936_p3 }
 0x1b9   : > { %1479 = dma.done.wait (!%p1203_p13), %s828_s16, 512  }
 0x1ba   : > { %1481 = vsyncadd (!%p1203_p13), %s828_s16, 4294966784  ;;  %s1938_s11 = sadd.s32 4294967294, %s1508_s23  }
 0x1bb   : > { %s836_s21 = sand.u32 1, %s1938_s11  }
 0x1bc   : > { %s837_s12 = scalar_lea.sflag [#allocation9], %s836_s21 }
 0x1bd   : > { %1483 = dma.done.wait (!%p1203_p13), %s837_s12, 1024  }
 0x1be   : > { %1485 = vsyncadd (!%p1203_p13), %s837_s12, 4294966272  ;;  %s26_s23 = sadd.s32 1, %s1508_s23   ;;  %s1939_s18 = smov %s1492_s19 }
 0x1bf   : > { %p23_p10 = scmp.ge.s32.totalorder %s26_s23, 4   ;;  %s1940_s19 = smov %s1496_s20 }
 0x1c0   : > { %s1941_s20 = smov %s1655_s13  ;;  %s1942_s21 = smov %s1504_s22 }
 0x1c1   : > { %s1943_s22 = smov %s1945_s7  ;;  %25 = sbr.rel (!%p23_p10) target bundleno = 13 (0xd), region = 113 }
 0x1c8   :  { %851 = vsyncpa [#allocation3], 1 }
 0x1c9   :  { %853 = vsyncpa [#allocation3 + $0x1], 1 }
 0x1ca   :  { %854 = vsyncpa [#allocation6], 1 }
 0x1cb   :  { %855 = vsyncpa [#allocation4], 1 }
 0x1cc   :  { %857 = vsyncpa [#allocation4 + $0x1], 1 }
 0x1cd   :  { %858 = vsyncpa [#allocation9], 1 }
 0x1ce   :  { %860 = vsyncpa [#allocation9 + $0x1], 1 }

</bundles_post_ra>
